<compile_context>
chip_gen: v5e
topology: v5e:2x2
jax: 0.10.0
libtpu: 0.0.40
codegen_flags: <defaults>
</compile_context>

<pallas_src>
import functools

import jax
import jax.numpy as jnp
from jax.experimental import pallas as pl
from jax.experimental.pallas import tpu as pltpu


# ----------------------------------------------------------------------------
# Kernel
# ----------------------------------------------------------------------------
def _complex_score_kernel(e_re_ref, e_im_ref, r_re_ref, r_im_ref,
                          pos_ref, neg_ref, *, tb):
    """One grid step = TB positive + TB matching negative triples.

    Row layout inside each block (built tile-major by the wrapper):
      e_*_ref : (4*TB, D) = [pos-h | neg-h | pos-t | neg-t]
      r_*_ref : (2*TB, D) = [pos-r | neg-r]
    Writes lane-dense (1, 1, TB) pos/neg score blocks.  No cross-step state,
    so the single grid axis is fully "parallel".
    """
    er = e_re_ref[...].astype(jnp.float32)
    ei = e_im_ref[...].astype(jnp.float32)
    rr = r_re_ref[...].astype(jnp.float32)
    ri = r_im_ref[...].astype(jnp.float32)

    h_re, t_re = er[: 2 * tb], er[2 * tb:]          # (2*TB, D): [pos | neg]
    h_im, t_im = ei[: 2 * tb], ei[2 * tb:]

    # Factored ComplEx score: rr*(hr*tr + hi*ti) + ri*(hr*ti - hi*tr)
    # (6 mul + 3 add per element instead of 8 mul + 3 add).
    s = rr * (h_re * t_re + h_im * t_im) + ri * (h_re * t_im - h_im * t_re)

    pos_ref[...] = (-jnp.sum(s[:tb], axis=-1)).reshape(1, 1, tb)
    neg_ref[...] = (-jnp.sum(s[tb:], axis=-1)).reshape(1, 1, tb)


# ----------------------------------------------------------------------------
# Generation-aware tile sizing
# ----------------------------------------------------------------------------
def _round_up(x, m):
    return ((x + m - 1) // m) * m


def _cdiv(a, b):
    return -(-a // b)


def _vmem_capacity_bytes():
    try:
        info = pltpu.get_tpu_info()
        cap = getattr(info, "vmem_capacity_bytes", None)
        if cap:
            return int(cap)
    except Exception:
        pass
    return 64 * 1024 * 1024  # v7x-sized fallback: safe lower bound on all gens


def _choose_tiling(half, d):
    """Pick (TB pairs per grid step, number of grid steps, vmem_limit_bytes)."""
    cap = _vmem_capacity_bytes()
    budget = min(48 * 1024 * 1024, int(cap * 0.6))   # double-buffered input budget
    d_pad = _round_up(max(d, 1), 128)                # lane-padded VMEM footprint
    # Per step: 12 logical (TB, d) f32 rows live in VMEM, double-buffered.
    bytes_per_pair = 12 * d_pad * 4 * 2
    tb_cap = max(8, budget // bytes_per_pair)
    tb_cap = min(tb_cap, 2048)        # ~85-86% of HBM roofline by 512-1024 rows
    tb_cap = (tb_cap // 8) * 8

    if half <= tb_cap:
        if half > 512:                # split so the parallel axis can use 2 TCs
            tb = _round_up(_cdiv(half, 2), 8)
        else:
            tb = max(8, _round_up(half, 8))
    else:
        tb = tb_cap
    nt = _cdiv(half, tb)
    if nt > 1 and nt % 2 == 1:        # prefer an even grid for v7x megacore
        tb = max(8, _round_up(_cdiv(half, nt + 1), 8))
        nt = _cdiv(half, tb)

    in_bytes = 12 * tb * d_pad * 4 * 2
    out_bytes = 2 * 2 * 8 * _round_up(tb, 128) * 4
    vmem_limit = min(cap - (8 << 20),
                     max(32 << 20, in_bytes + out_bytes + (16 << 20)))
    return tb, nt, vmem_limit


# ----------------------------------------------------------------------------
# Wrapper
# ----------------------------------------------------------------------------
@functools.partial(jax.jit, static_argnames=("margin",))
def complex_forward(ent_re_w, ent_im_w, rel_re_w, rel_im_w,
                    batch_h, batch_t, batch_r, batch_y, *, margin):
    D = ent_re_w.shape[1]
    B = batch_h.shape[0]
    half = B // 2                      # assumes even B, as in the torch module
    tb, nt, vmem_limit = _choose_tiling(half, D)
    half_pad = nt * tb

    def split_pad(idx):
        p, n = idx[:half], idx[half:2 * half]
        if half_pad > half:
            pad = (0, half_pad - half)
            p, n = jnp.pad(p, pad), jnp.pad(n, pad)    # pad with row 0 (discarded)
        return p.reshape(nt, tb), n.reshape(nt, tb)

    h_pos, h_neg = split_pad(batch_h)
    t_pos, t_neg = split_pad(batch_t)
    r_pos, r_neg = split_pad(batch_r)

    # Tile-major gather layout: for grid step i the rows
    #   ent_idx[i*4*tb:(i+1)*4*tb] = [pos-h | neg-h | pos-t | neg-t]
    #   rel_idx[i*2*tb:(i+1)*2*tb] = [pos-r | neg-r]
    # are contiguous, so each gathered slab is read by the kernel as ONE
    # contiguous wide block per step (4 DMAs/step instead of 12).
    ent_idx = jnp.concatenate([h_pos, h_neg, t_pos, t_neg], axis=1).reshape(-1)
    rel_idx = jnp.concatenate([r_pos, r_neg], axis=1).reshape(-1)

    # Embedding lookups (glue, left to XLA -- see TODO(synk) at the top).
    e_re = jnp.take(ent_re_w, ent_idx, axis=0)      # (4*half_pad, D)
    e_im = jnp.take(ent_im_w, ent_idx, axis=0)      # (4*half_pad, D)
    r_re = jnp.take(rel_re_w, rel_idx, axis=0)      # (2*half_pad, D)
    r_im = jnp.take(rel_im_w, rel_idx, axis=0)      # (2*half_pad, D)

    cost = pl.CostEstimate(
        flops=20 * half_pad * D,                    # ~10 flop/elem, 2*half_pad rows
        transcendentals=0,
        bytes_accessed=12 * half_pad * D * 4 + 2 * half_pad * 4,
    )

    pos_blk, neg_blk = pl.pallas_call(
        functools.partial(_complex_score_kernel, tb=tb),
        out_shape=(jax.ShapeDtypeStruct((nt, 1, tb), jnp.float32),
                   jax.ShapeDtypeStruct((nt, 1, tb), jnp.float32)),
        grid=(nt,),
        in_specs=[
            pl.BlockSpec((4 * tb, D), lambda i: (i, 0)),   # entity re slab
            pl.BlockSpec((4 * tb, D), lambda i: (i, 0)),   # entity im slab
            pl.BlockSpec((2 * tb, D), lambda i: (i, 0)),   # relation re slab
            pl.BlockSpec((2 * tb, D), lambda i: (i, 0)),   # relation im slab
        ],
        out_specs=(
            pl.BlockSpec((1, 1, tb), lambda i: (i, 0, 0)),
            pl.BlockSpec((1, 1, tb), lambda i: (i, 0, 0)),
        ),
        compiler_params=pltpu.CompilerParams(
            dimension_semantics=("parallel",),
            vmem_limit_bytes=vmem_limit),
        cost_estimate=cost,
    )(e_re, e_im, r_re, r_im)

    pos = pos_blk.reshape(half_pad)[:half]
    neg = neg_blk.reshape(half_pad)[:half]

    # MarginRankingLoss(margin, reduction='sum') with target hard-coded to -1.
    loss = jnp.sum(jnp.maximum(pos - neg + jnp.float32(margin), 0.0))

    # batch_y is unused in the original forward (target is hard-coded to -1);
    # `regul` is computed but never used/returned by the PyTorch module.
    return loss, pos, neg


# ----------------------------------------------------------------------------
# Deterministic parameter init (xavier_uniform) + demo
# ----------------------------------------------------------------------------
def xavier_uniform(key, shape, dtype=jnp.float32):
    fan_in, fan_out = shape[0], shape[1]
    bound = jnp.sqrt(6.0 / (fan_in + fan_out))
    return jax.random.uniform(key, shape, dtype, minval=-bound, maxval=bound)


if __name__ == "__main__":
    TOTAL_ENT = 32      # params.total_ent (rel tables also sized by total_ent,
                        # matching the original module verbatim)
    EMBED_DIM = 32      # params.embedding_dim
    MARGIN = 1.0        # params.margin
    BATCH = 16          # first half positive triples, second half negative

    key = jax.random.PRNGKey(0)
    k0, k1, k2, k3, kh, kt, kr = jax.random.split(key, 7)

    ent_re_w = xavier_uniform(k0, (TOTAL_ENT, EMBED_DIM))
    ent_im_w = xavier_uniform(k1, (TOTAL_ENT, EMBED_DIM))
    rel_re_w = xavier_uniform(k2, (TOTAL_ENT, EMBED_DIM))
    rel_im_w = xavier_uniform(k3, (TOTAL_ENT, EMBED_DIM))

    batch_h = jax.random.randint(kh, (BATCH,), 0, TOTAL_ENT, dtype=jnp.int32)
    batch_t = jax.random.randint(kt, (BATCH,), 0, TOTAL_ENT, dtype=jnp.int32)
    batch_r = jax.random.randint(kr, (BATCH,), 0, TOTAL_ENT, dtype=jnp.int32)
    batch_y = jnp.concatenate(
        [jnp.ones((BATCH // 2,), jnp.float32), -jnp.ones((BATCH // 2,), jnp.float32)]
    )

    loss, pos_score, neg_score = complex_forward(
        ent_re_w, ent_im_w, rel_re_w, rel_im_w,
        batch_h, batch_t, batch_r, batch_y, margin=MARGIN)

    jax.block_until_ready((loss, pos_score, neg_score))

    # Pure-JAX reference check.
    def ref():
        h_re = ent_re_w[batch_h]; h_im = ent_im_w[batch_h]
        t_re = ent_re_w[batch_t]; t_im = ent_im_w[batch_t]
        r_re = rel_re_w[batch_r]; r_im = rel_im_w[batch_r]
        s = -jnp.sum(h_re * t_re * r_re + h_im * t_im * r_re
                     + h_re * t_im * r_im - h_im * t_re * r_im, axis=-1)
        p, n = s[:BATCH // 2], s[BATCH // 2:]
        l = jnp.sum(jnp.maximum(0.0, p - n + MARGIN))
        return l, p, n

    rl, rp, rn = ref()
    assert jnp.allclose(loss, rl, atol=1e-5, rtol=1e-5)
    assert jnp.allclose(pos_score, rp, atol=1e-5, rtol=1e-5)
    assert jnp.allclose(neg_score, rn, atol=1e-5, rtol=1e-5)

    print("KERNEL_OK")
</pallas_src>

<mosaic_0001>
module attributes {stable_mosaic.version = 11 : i64} {
  func.func @_complex_score_kernel(%arg0: i32, %arg1: memref<32x32xf32, #tpu.memory_space<vmem>>, %arg2: memref<32x32xf32, #tpu.memory_space<vmem>>, %arg3: memref<16x32xf32, #tpu.memory_space<vmem>>, %arg4: memref<16x32xf32, #tpu.memory_space<vmem>>, %arg5: memref<1x1x8xf32, #tpu.memory_space<vmem>>, %arg6: memref<1x1x8xf32, #tpu.memory_space<vmem>>) attributes {dimension_semantics = [#tpu.dimension_semantics<parallel>], iteration_bounds = array<i64: 1>, scalar_prefetch = 0 : i64, scratch_operands = 0 : i64, tpu.core_type = #tpu.core_type<tc>, window_params = [{transform_indices = @transform_0, window_bounds = array<i64: 32, 32>}, {transform_indices = @transform_1, window_bounds = array<i64: 32, 32>}, {transform_indices = @transform_2, window_bounds = array<i64: 16, 32>}, {transform_indices = @transform_3, window_bounds = array<i64: 16, 32>}, {transform_indices = @transform_4, window_bounds = array<i64: 1, 1, 8>}, {transform_indices = @transform_5, window_bounds = array<i64: 1, 1, 8>}]} {
    %c0 = arith.constant 0 : index
    %c0_0 = arith.constant 0 : index
    %0 = vector.load %arg1[%c0, %c0_0] : memref<32x32xf32, #tpu.memory_space<vmem>>, vector<32x32xf32>
    %c0_1 = arith.constant 0 : index
    %c0_2 = arith.constant 0 : index
    %1 = vector.load %arg2[%c0_1, %c0_2] : memref<32x32xf32, #tpu.memory_space<vmem>>, vector<32x32xf32>
    %c0_3 = arith.constant 0 : index
    %c0_4 = arith.constant 0 : index
    %2 = vector.load %arg3[%c0_3, %c0_4] : memref<16x32xf32, #tpu.memory_space<vmem>>, vector<16x32xf32>
    %c0_5 = arith.constant 0 : index
    %c0_6 = arith.constant 0 : index
    %3 = vector.load %arg4[%c0_5, %c0_6] : memref<16x32xf32, #tpu.memory_space<vmem>>, vector<16x32xf32>
    %4 = vector.extract_strided_slice %0 {offsets = [0, 0], sizes = [16, 32], strides = [1, 1]} : vector<32x32xf32> to vector<16x32xf32>
    %5 = vector.extract_strided_slice %0 {offsets = [16, 0], sizes = [16, 32], strides = [1, 1]} : vector<32x32xf32> to vector<16x32xf32>
    %6 = vector.extract_strided_slice %1 {offsets = [0, 0], sizes = [16, 32], strides = [1, 1]} : vector<32x32xf32> to vector<16x32xf32>
    %7 = vector.extract_strided_slice %1 {offsets = [16, 0], sizes = [16, 32], strides = [1, 1]} : vector<32x32xf32> to vector<16x32xf32>
    %8 = arith.mulf %4, %5 : vector<16x32xf32>
    %9 = arith.mulf %6, %7 : vector<16x32xf32>
    %10 = arith.addf %8, %9 : vector<16x32xf32>
    %11 = arith.mulf %2, %10 : vector<16x32xf32>
    %12 = arith.mulf %4, %7 : vector<16x32xf32>
    %13 = arith.mulf %6, %5 : vector<16x32xf32>
    %14 = arith.subf %12, %13 : vector<16x32xf32>
    %15 = arith.mulf %3, %14 : vector<16x32xf32>
    %16 = arith.addf %11, %15 : vector<16x32xf32>
    %17 = vector.extract_strided_slice %16 {offsets = [0, 0], sizes = [8, 32], strides = [1, 1]} : vector<16x32xf32> to vector<8x32xf32>
    %cst = arith.constant dense<0.000000e+00> : vector<8xf32>
    %18 = vector.multi_reduction <add>, %17, %cst [1] : vector<8x32xf32> to vector<8xf32>
    %cst_7 = arith.constant 0.000000e+00 : f32
    %19 = vector.broadcast %cst_7 : f32 to vector<8xf32>
    %20 = arith.subf %19, %18 : vector<8xf32>
    %21 = vector.shape_cast %20 : vector<8xf32> to vector<1x1x8xf32>
    %c0_8 = arith.constant 0 : index
    %c0_9 = arith.constant 0 : index
    %c0_10 = arith.constant 0 : index
    %22 = vector.load %arg5[%c0_8, %c0_9, %c0_10] : memref<1x1x8xf32, #tpu.memory_space<vmem>>, vector<1x1x8xf32>
    tpu.vector_store %arg5[%c0_8, %c0_9, %c0_10], %21 {strides = array<i32>} : memref<1x1x8xf32, #tpu.memory_space<vmem>>, vector<1x1x8xf32>,
    %23 = vector.extract_strided_slice %16 {offsets = [8, 0], sizes = [8, 32], strides = [1, 1]} : vector<16x32xf32> to vector<8x32xf32>
    %cst_11 = arith.constant dense<0.000000e+00> : vector<8xf32>
    %24 = vector.multi_reduction <add>, %23, %cst_11 [1] : vector<8x32xf32> to vector<8xf32>
    %cst_12 = arith.constant 0.000000e+00 : f32
    %25 = vector.broadcast %cst_12 : f32 to vector<8xf32>
    %26 = arith.subf %25, %24 : vector<8xf32>
    %27 = vector.shape_cast %26 : vector<8xf32> to vector<1x1x8xf32>
    %c0_13 = arith.constant 0 : index
    %c0_14 = arith.constant 0 : index
    %c0_15 = arith.constant 0 : index
    %28 = vector.load %arg6[%c0_13, %c0_14, %c0_15] : memref<1x1x8xf32, #tpu.memory_space<vmem>>, vector<1x1x8xf32>
    tpu.vector_store %arg6[%c0_13, %c0_14, %c0_15], %27 {strides = array<i32>} : memref<1x1x8xf32, #tpu.memory_space<vmem>>, vector<1x1x8xf32>,
    return
  }
  func.func @transform_0(%arg0: i32) -> (i32, i32) {
    %c0_i32 = arith.constant 0 : i32
    %c0_i32_0 = arith.constant 0 : i32
    return %arg0, %c0_i32 : i32, i32
  }
  func.func @transform_1(%arg0: i32) -> (i32, i32) {
    %c0_i32 = arith.constant 0 : i32
    %c0_i32_0 = arith.constant 0 : i32
    return %arg0, %c0_i32 : i32, i32
  }
  func.func @transform_2(%arg0: i32) -> (i32, i32) {
    %c0_i32 = arith.constant 0 : i32
    %c0_i32_0 = arith.constant 0 : i32
    return %arg0, %c0_i32 : i32, i32
  }
  func.func @transform_3(%arg0: i32) -> (i32, i32) {
    %c0_i32 = arith.constant 0 : i32
    %c0_i32_0 = arith.constant 0 : i32
    return %arg0, %c0_i32 : i32, i32
  }
  func.func @transform_4(%arg0: i32) -> (i32, i32, i32) {
    %c0_i32 = arith.constant 0 : i32
    %c0_i32_0 = arith.constant 0 : i32
    %c0_i32_1 = arith.constant 0 : i32
    return %arg0, %c0_i32, %c0_i32_0 : i32, i32, i32
  }
  func.func @transform_5(%arg0: i32) -> (i32, i32, i32) {
    %c0_i32 = arith.constant 0 : i32
    %c0_i32_0 = arith.constant 0 : i32
    %c0_i32_1 = arith.constant 0 : i32
    return %arg0, %c0_i32, %c0_i32_0 : i32, i32, i32
  }
}

</mosaic_0001>

<bundles_post_ra>
// kernel: complex_forward.1
= control target key start
LH: loop header
LB: loop body
LE: loop exit
PB: predicated region body
PF: predicated region fallthrough
CT: control target
= control target key end

     0   :  { %vm49_vm0 = vcmask 261120   ;;  %v55_v32 = vlaneseq  ;;  %vm59_vm1 = vcmask 57344   ;;  %s149_s0 = inlined_call_operand.vmem [shape: f32[32,32], index: 0, kind: input, shape index: {}]   ;;  %s150_s1 = inlined_call_operand.vmem [shape: f32[32,32], index: 1, kind: input, shape index: {}]   ;;  %s151_s2 = inlined_call_operand.vmem [shape: f32[16,32], index: 2, kind: input, shape index: {}]   ;;  %s152_s3 = inlined_call_operand.vmem [shape: f32[16,32], index: 3, kind: input, shape index: {}]   ;;  %s153_s4 = inlined_call_operand.vmem [shape: f32[1,1,8], index: 4, kind: output, shape index: {0}]   ;;  %s154_s5 = inlined_call_operand.vmem [shape: f32[1,1,8], index: 5, kind: output, shape index: {1}]  }
   0x1   :  { %v19_v0 = vld [vmem:[%s149_s0] sm:$0xff]  ;;  %v21_v1 = vld [vmem:[%s149_s0 + $0x10] sm:$0xff]  ;;  %v20_v8 = vld [vmem:[%s149_s0 + $0x8] sm:$0xff] }
   0x2   :  { %v23_v2 = vld [vmem:[%s150_s1] sm:$0xff]  ;;  %v25_v3 = vld [vmem:[%s150_s1 + $0x10] sm:$0xff]  ;;  %v31_v4 = vmul.f32 %v21_v1, %v19_v0  ;;  %v22_v9 = vld [vmem:[%s149_s0 + $0x18] sm:$0xff]  ;;  %v56_v33 = vand.u32 127, %v55_v32 }
   0x3   :  { %v41_v5 = vmul.f32 %v23_v2, %v21_v1  ;;  %v33_v6 = vmul.f32 %v25_v3, %v23_v2  ;;  %v39_v7 = vmul.f32 %v25_v3, %v19_v0  ;;  %v24_v10 = vld [vmem:[%s150_s1 + $0x8] sm:$0xff]  ;;  %v27_v11 = vld [vmem:[%s151_s2] sm:$0xff]  ;;  %v26_v13 = vld [vmem:[%s150_s1 + $0x18] sm:$0xff]  ;;  %v32_v14 = vmul.f32 %v22_v9, %v20_v8 }
   0x4   :  { %v29_v12 = vld [vmem:[%s152_s3] sm:$0xff]  ;;  %v42_v15 = vmul.f32 %v24_v10, %v22_v9  ;;  %v34_v18 = vmul.f32 %v26_v13, %v24_v10  ;;  %v40_v19 = vmul.f32 %v26_v13, %v20_v8  ;;  %v28_v20 = vld [vmem:[%s151_s2 + $0x8] sm:$0xff] }
   0x5   :  { %v35_v16 = vadd.f32 %v33_v6, %v31_v4  ;;  %v43_v17 = vsub.f32 %v39_v7, %v41_v5  ;;  %v30_v21 = vld [vmem:[%s152_s3 + $0x8] sm:$0xff] }
   0x6   :  { %v36_v24 = vadd.f32 %v34_v18, %v32_v14  ;;  %v44_v25 = vsub.f32 %v40_v19, %v42_v15 }
   0x7   :  { %v37_v22 = vmul.f32 %v35_v16, %v27_v11  ;;  %v45_v23 = vmul.f32 %v43_v17, %v29_v12 }
   0x8   :  { %v38_v27 = vmul.f32 %v36_v24, %v28_v20  ;;  %v46_v28 = vmul.f32 %v44_v25, %v30_v21 }
   0x9   :  { %v47_v26 = vadd.f32 %v45_v23, %v37_v22 }
   0xa   :  { %v48_v30 = vadd.f32 %v46_v28, %v38_v27 }
   0xb   :  { %v50_v29 = vsel %vm49_vm0, %v47_v26, 0.0 }
   0xc   :  { %51 = vadd.xlane.f32.xlu0 %v50_v29  ;;  %v61_v31 = vsel %vm49_vm0, %v48_v30, 0.0 }
  0x14   :  { %62 = vadd.xlane.f32.xlu0 %v61_v31 }
  0x7f   :  { %v52_v34 = vpop.xlane.xlu0 %51 }
  0x80   :  { %v53_v35 = vsub.f32 0.0, %v52_v34 }
  0x82   :  { %v57_v36 = vperm.slane %v53_v35, %v56_v33 }
  0x84   :  { %60 = vst.msk [vmem:[%s153_s4] sm:$0x1] %vm59_vm1, %v57_v36 }
  0x87   :  { %v63_v37 = vpop.xlane.xlu0 %62 }
  0x88   :  { %v64_v38 = vsub.f32 0.0, %v63_v37 }
  0x8a   :  { %v66_v39 = vperm.slane %v64_v38, %v56_v33 }
  0x8c   :  { %68 = vst.msk [vmem:[%s154_s5] sm:$0x1] %vm59_vm1, %v66_v39 }

</bundles_post_ra>
